<compile_context>
chip_gen: v5e
topology: v5e:2x2
jax: 0.10.0
libtpu: 0.0.40
codegen_flags: <defaults>
</compile_context>

<pallas_src>
import jax
import jax.numpy as jnp
from jax.experimental import pallas as pl
from jax.experimental.pallas import tpu as pltpu


def _make_se_kernel(inv_hw, scale_in_io_dtype):
    """inv_hw = 1 / (true H*W).  scale_in_io_dtype: do the final multiply in the
    input/output dtype (bf16-native VALU on v6e/v7x) instead of f32."""

    def se_attention_kernel(x_ref, w1_ref, w2_ref, o_ref):
        # x_ref/o_ref: (B_blk, C, HW)   w1_ref: (C, Cr)   w2_ref: (Cr, C)

        # Squeeze: global average pool over spatial lanes, f32 accumulation.
        # (No full-block f32 temp is kept live for reuse below.)
        y = jnp.sum(x_ref[...], axis=-1, dtype=jnp.float32) * inv_hw    # (Bb, C)

        # Excitation: Linear(C->Cr, no bias) + ReLU, Linear(Cr->C, no bias) + Sigmoid.
        h = jnp.maximum(
            jnp.dot(y, w1_ref[...], preferred_element_type=jnp.float32), 0.0)   # (Bb, Cr)
        s = jax.nn.sigmoid(
            jnp.dot(h, w2_ref[...], preferred_element_type=jnp.float32))        # (Bb, C)

        # Scale: broadcast per-(image, channel) gate over spatial lanes.
        if scale_in_io_dtype:
            # bf16-native elementwise path (v6e/v7x); gate in [0,1] so bf16 is fine.
            o_ref[...] = x_ref[...] * s.astype(o_ref.dtype)[:, :, None]
        else:
            o_ref[...] = (x_ref[...].astype(jnp.float32)
                          * s[:, :, None]).astype(o_ref.dtype)

    return se_attention_kernel


# Per-generation tiling / VMEM config.
_CHIP_CONFIG = {
    # block_bytes: per-step input block target; vmem_limit: scoped VMEM override;
    # min_grid: minimum grid extent (>= 2 steps per TC on v7x's two cores);
    # io_dtype_scale: do the final multiply in the I/O dtype when input is bf16.
    "v5e":     dict(block_bytes=4 << 20,  vmem_limit=32 << 20, min_grid=1, io_dtype_scale=False),
    "v6e":     dict(block_bytes=12 << 20, vmem_limit=80 << 20, min_grid=1, io_dtype_scale=True),
    "v7x":     dict(block_bytes=7 << 20,  vmem_limit=48 << 20, min_grid=4, io_dtype_scale=True),
    "unknown": dict(block_bytes=4 << 20,  vmem_limit=48 << 20, min_grid=1, io_dtype_scale=False),
}


def _chip_generation():
    try:
        kind = jax.devices()[0].device_kind.lower()
    except Exception:
        return "unknown"
    if "v6" in kind:
        return "v6e"
    if "v5 lite" in kind or "v5e" in kind or "v5lite" in kind:
        return "v5e"
    if "7x" in kind or "v7" in kind:
        return "v7x"
    return "unknown"


def se_attention(x, w1, w2, *, target_block_bytes=None, vmem_limit_bytes=None,
                 block_batch=None):
    """x: (B, C, H, W) f32/bf16, w1: (C, C//r), w2: (C//r, C). Returns (B, C, H, W)."""
    B, C, H, W = x.shape
    HW = H * W
    Cr = w1.shape[1]
    itemsize = jnp.dtype(x.dtype).itemsize

    cfg = _CHIP_CONFIG[_chip_generation()]
    if target_block_bytes is None:
        target_block_bytes = cfg["block_bytes"]
    if vmem_limit_bytes is None:
        vmem_limit_bytes = cfg["vmem_limit"]

    # Flat spatial view; free row-major metadata reshape (no padding, no copy).
    x_flat = x.reshape(B, C, HW)

    # cdiv-based batch blocking: pick b_blk from the byte target, let the last
    # block be ragged.  On v7x keep >= 2 steps per TensorCore so the pipeline
    # still overlaps DMA on both cores.
    per_img = C * HW * itemsize
    if block_batch is not None:
        b_blk = max(1, min(int(block_batch), B))
    else:
        b_blk = max(1, min(B, target_block_bytes // max(per_img, 1)))
        min_grid = min(cfg["min_grid"], B)
        if pl.cdiv(B, b_blk) < min_grid:
            b_blk = max(1, B // min_grid)
    grid_b = pl.cdiv(B, b_blk)

    scale_in_io_dtype = cfg["io_dtype_scale"] and x.dtype != jnp.float32

    w1f = w1.astype(jnp.float32)
    w2f = w2.astype(jnp.float32)

    cost = pl.CostEstimate(
        flops=2 * B * (C * Cr * 2) + 2 * B * C * HW,        # two FCs + mean + scale
        transcendentals=B * C,                              # sigmoid
        bytes_accessed=2 * B * C * HW * itemsize + 4 * (w1.size + w2.size),
    )

    out = pl.pallas_call(
        _make_se_kernel(1.0 / HW, scale_in_io_dtype),
        out_shape=jax.ShapeDtypeStruct((B, C, HW), x.dtype),
        grid_spec=pltpu.PrefetchScalarGridSpec(
            num_scalar_prefetch=0,
            grid=(grid_b,),
            in_specs=[
                pl.BlockSpec((b_blk, C, HW), lambda b: (b, 0, 0)),
                pl.BlockSpec((C, Cr), lambda b: (0, 0)),
                pl.BlockSpec((Cr, C), lambda b: (0, 0)),
            ],
            out_specs=pl.BlockSpec((b_blk, C, HW), lambda b: (b, 0, 0)),
        ),
        compiler_params=pltpu.CompilerParams(
            dimension_semantics=("parallel",),
            vmem_limit_bytes=vmem_limit_bytes,
        ),
        cost_estimate=cost,
    )(x_flat, w1f, w2f)

    return out.reshape(B, C, H, W)


def se_attention_ref(x, w1, w2):
    """Pure-JAX reference matching the PyTorch module semantics (f32 math)."""
    xf = x.astype(jnp.float32)
    y = jnp.mean(xf, axis=(2, 3))                 # (B, C)  adaptive avg pool to 1x1
    y = jnp.maximum(y @ w1, 0.0)                  # (B, C//r)
    y = jax.nn.sigmoid(y @ w2)                    # (B, C)
    return xf * y[:, :, None, None]


if __name__ == "__main__":
    key = jax.random.PRNGKey(0)
    kx, k1, k2, kx2, k3, k4 = jax.random.split(key, 6)

    # --- Case 1: channel=32, reduction=4, 16x16 spatial (HW multiple of 128) ---
    B, C, H, W = 2, 32, 16, 16
    Cr = C // 4
    x = jax.random.normal(kx, (B, C, H, W), dtype=jnp.float32)
    # nn.Linear(C, Cr, bias=False).weight is (Cr, C); stored transposed as (C, Cr).
    w1 = jax.random.normal(k1, (C, Cr), dtype=jnp.float32) * (1.0 / jnp.sqrt(C))
    # nn.Linear(Cr, C, bias=False).weight is (C, Cr); stored transposed as (Cr, C).
    w2 = jax.random.normal(k2, (Cr, C), dtype=jnp.float32) * (1.0 / jnp.sqrt(Cr))

    out = se_attention(x, w1, w2)
    jax.block_until_ready(out)
    ref = se_attention_ref(x, w1, w2)
    assert out.shape == (B, C, H, W)
    assert jnp.allclose(out, ref, atol=1e-5, rtol=1e-5), "f32 mismatch vs reference"

    # bf16 I/O path (halves HBM traffic; excitation math stays f32 in the kernel).
    x_bf16 = x.astype(jnp.bfloat16)
    out_bf = se_attention(x_bf16, w1, w2)
    jax.block_until_ready(out_bf)
    ref_bf = se_attention_ref(x_bf16, w1, w2)
    assert out_bf.dtype == jnp.bfloat16
    assert jnp.allclose(out_bf.astype(jnp.float32), ref_bf, atol=5e-2, rtol=5e-2), \
        "bf16 mismatch vs reference"

    # --- Case 2: non-128-multiple spatial (7x7) + ragged batch blocking ---
    B2, C2, H2, W2 = 3, 16, 7, 7
    Cr2 = C2 // 4
    x2 = jax.random.normal(kx2, (B2, C2, H2, W2), dtype=jnp.float32)
    w1b = jax.random.normal(k3, (C2, Cr2), dtype=jnp.float32) * (1.0 / jnp.sqrt(C2))
    w2b = jax.random.normal(k4, (Cr2, C2), dtype=jnp.float32) * (1.0 / jnp.sqrt(Cr2))

    out2 = se_attention(x2, w1b, w2b, block_batch=2)   # grid = cdiv(3,2): ragged last block
    jax.block_until_ready(out2)
    ref2 = se_attention_ref(x2, w1b, w2b)
    assert out2.shape == (B2, C2, H2, W2)
    assert jnp.allclose(out2, ref2, atol=1e-5, rtol=1e-5), "ragged/unpadded mismatch vs reference"

    print("KERNEL_OK")
</pallas_src>

<mosaic_0001>
module attributes {stable_mosaic.version = 11 : i64} {
  func.func @se_attention_kernel(%arg0: i32, %arg1: memref<2x32x256xf32, #tpu.memory_space<vmem>>, %arg2: memref<32x8xf32, #tpu.memory_space<vmem>>, %arg3: memref<8x32xf32, #tpu.memory_space<vmem>>, %arg4: memref<2x32x256xf32, #tpu.memory_space<vmem>>) attributes {dimension_semantics = [#tpu.dimension_semantics<parallel>], iteration_bounds = array<i64: 1>, scalar_prefetch = 0 : i64, scratch_operands = 0 : i64, tpu.core_type = #tpu.core_type<tc>, window_params = [{transform_indices = @transform_0, window_bounds = array<i64: 2, 32, 256>}, {pipeline_mode = #tpu.pipeline_mode<synchronous>, transform_indices = @transform_1, window_bounds = array<i64: 32, 8>}, {pipeline_mode = #tpu.pipeline_mode<synchronous>, transform_indices = @transform_2, window_bounds = array<i64: 8, 32>}, {transform_indices = @transform_3, window_bounds = array<i64: 2, 32, 256>}]} {
    %c0 = arith.constant 0 : index
    %c0_0 = arith.constant 0 : index
    %c0_1 = arith.constant 0 : index
    %0 = vector.load %arg1[%c0, %c0_0, %c0_1] : memref<2x32x256xf32, #tpu.memory_space<vmem>>, vector<2x32x256xf32>
    %cst = arith.constant dense<0.000000e+00> : vector<2x32xf32>
    %1 = vector.multi_reduction <add>, %0, %cst [2] : vector<2x32x256xf32> to vector<2x32xf32>
    %cst_2 = arith.constant 3.906250e-03 : f32
    %2 = vector.broadcast %cst_2 : f32 to vector<2x32xf32>
    %3 = arith.mulf %1, %2 : vector<2x32xf32>
    %c0_3 = arith.constant 0 : index
    %c0_4 = arith.constant 0 : index
    %4 = vector.load %arg2[%c0_3, %c0_4] : memref<32x8xf32, #tpu.memory_space<vmem>>, vector<32x8xf32>
    %cst_5 = arith.constant dense<0.000000e+00> : vector<2x8xf32>
    %5 = tpu.matmul %3, %4, %cst_5 {dimension_numbers = #tpu.dot_dimension_numbers<[1], [0], [0], [1], [0, 0, 1, 1], [], []>} : vector<2x32xf32>, vector<32x8xf32>, vector<2x8xf32> -> vector<2x8xf32>
    %cst_6 = arith.constant 0.000000e+00 : f32
    %6 = vector.broadcast %cst_6 : f32 to vector<2x8xf32>
    %7 = arith.maximumf %5, %6 : vector<2x8xf32>
    %c0_7 = arith.constant 0 : index
    %c0_8 = arith.constant 0 : index
    %8 = vector.load %arg3[%c0_7, %c0_8] : memref<8x32xf32, #tpu.memory_space<vmem>>, vector<8x32xf32>
    %cst_9 = arith.constant dense<0.000000e+00> : vector<2x32xf32>
    %9 = tpu.matmul %7, %8, %cst_9 {dimension_numbers = #tpu.dot_dimension_numbers<[1], [0], [0], [1], [0, 0, 1, 1], [], []>} : vector<2x8xf32>, vector<8x32xf32>, vector<2x32xf32> -> vector<2x32xf32>
    %10 = arith.negf %9 : vector<2x32xf32>
    %11 = math.exp %10 : vector<2x32xf32>
    %cst_10 = arith.constant 1.000000e+00 : f32
    %12 = vector.broadcast %cst_10 : f32 to vector<2x32xf32>
    %13 = arith.addf %12, %11 : vector<2x32xf32>
    %14 = arith.divf %12, %13 : vector<2x32xf32>
    %c0_11 = arith.constant 0 : index
    %c0_12 = arith.constant 0 : index
    %c0_13 = arith.constant 0 : index
    %15 = vector.load %arg1[%c0_11, %c0_12, %c0_13] : memref<2x32x256xf32, #tpu.memory_space<vmem>>, vector<2x32x256xf32>
    %16 = vector.shape_cast %14 : vector<2x32xf32> to vector<2x32x1xf32>
    %17 = vector.broadcast %16 : vector<2x32x1xf32> to vector<2x32x256xf32>
    %18 = arith.mulf %15, %17 : vector<2x32x256xf32>
    %c0_14 = arith.constant 0 : index
    %c0_15 = arith.constant 0 : index
    %c0_16 = arith.constant 0 : index
    %19 = vector.load %arg4[%c0_14, %c0_15, %c0_16] : memref<2x32x256xf32, #tpu.memory_space<vmem>>, vector<2x32x256xf32>
    tpu.vector_store %arg4[%c0_14, %c0_15, %c0_16], %18 {strides = array<i32>} : memref<2x32x256xf32, #tpu.memory_space<vmem>>, vector<2x32x256xf32>,
    return
  }
  func.func @transform_0(%arg0: i32) -> (i32, i32, i32) {
    %c0_i32 = arith.constant 0 : i32
    %c0_i32_0 = arith.constant 0 : i32
    %c0_i32_1 = arith.constant 0 : i32
    return %arg0, %c0_i32, %c0_i32_0 : i32, i32, i32
  }
  func.func @transform_1(%arg0: i32) -> (i32, i32) {
    %c0_i32 = arith.constant 0 : i32
    %c0_i32_0 = arith.constant 0 : i32
    %c0_i32_1 = arith.constant 0 : i32
    return %c0_i32, %c0_i32_0 : i32, i32
  }
  func.func @transform_2(%arg0: i32) -> (i32, i32) {
    %c0_i32 = arith.constant 0 : i32
    %c0_i32_0 = arith.constant 0 : i32
    %c0_i32_1 = arith.constant 0 : i32
    return %c0_i32, %c0_i32_0 : i32, i32
  }
  func.func @transform_3(%arg0: i32) -> (i32, i32, i32) {
    %c0_i32 = arith.constant 0 : i32
    %c0_i32_0 = arith.constant 0 : i32
    %c0_i32_1 = arith.constant 0 : i32
    return %arg0, %c0_i32, %c0_i32_0 : i32, i32, i32
  }
}

</mosaic_0001>

<bundles_post_ra>
// kernel: tpu_custom_call.1
= control target key start
LH: loop header
LB: loop body
LE: loop exit
PB: predicated region body
PF: predicated region fallthrough
CT: control target
= control target key end

     0   :  { %8 = vsyncpa [#allocation3], 0  ;;  %s471_s0 = inlined_call_operand.hbm [shape: f32[2,32,256], index: 0, kind: input, shape index: {}]   ;;  %s472_s1 = inlined_call_operand.vmem [shape: f32[32,8], index: 1, kind: input, shape index: {}]   ;;  %s473_s2 = inlined_call_operand.vmem [shape: f32[8,32], index: 2, kind: input, shape index: {}]   ;;  %s474_s3 = inlined_call_operand.hbm [shape: f32[2,32,256], index: 3, kind: output, shape index: {}]  }
   0x1   :  { %9 = vsyncpa [#allocation4], 0  ;;  %s14_s14 = sshll.u32 %s471_s0, 4  ;;  %s356_s15 = smov [#allocation2]   ;;  %s15_s14 = int_to_ptr.hbm [resolvable:$true] %s14_s14 }
   0x2   :  { %s16_s16 = sshll.u32 %s356_s15, 4  ;;  %s357_s17 = smov 256   ;;  %s17_s16 = int_to_ptr.vmem [resolvable:$true] %s16_s16 }
   0x3   :  { %s358_s18 = smov 16  }
   0x4   :  { %22 = dma.hbm_to_vmem [thread:$0]  %s15_s14, 2048, %s17_s16, [#allocation3], %s357_s17, %s357_s17, %s358_s18  }
   0x5   :  { %352 = dma.done.wait [#allocation3], 2048  }
   0x6   :  { %353 = vsyncadd [#allocation3], 4294965248  ;;  %v386_v0 = vld [vmem:[#allocation2 + $0x40] sm:$0xff]  ;;  %v388_v1 = vld [vmem:[#allocation2 + $0x48] sm:$0xff]  ;;  %v91_v31 = vlaneseq  ;;  %vm96_vm0 = vcmask 130112   ;;  %vm100_vm1 = vcmask 195712  }
   0x7   :  { %v390_v2 = vld [vmem:[#allocation2] sm:$0xff]  ;;  %v59_v3 = vadd.f32 %v388_v1, %v386_v0  ;;  %v394_v4 = vld [vmem:[#allocation2 + $0x8] sm:$0xff]  ;;  %v404_v9 = vld [vmem:[#allocation2 + $0x50] sm:$0xff]  ;;  %vm104_vm2 = vcmask 261312   ;;  %vm113_vm3 = vcmask 1041409   ;;  %vm115_vm4 = vcmask 261120  }
   0x8   :  { %v396_v5 = vld [vmem:[#allocation2 + $0x20] sm:$0xff]  ;;  %v398_v6 = vld [vmem:[#allocation2 + $0x28] sm:$0xff]  ;;  %v47_v7 = vadd.f32 %v394_v4, %v390_v2  ;;  %v406_v10 = vld [vmem:[#allocation2 + $0x58] sm:$0xff]  ;;  %v92_v32 = vand.u32 127, %v91_v31  ;;  %vm140_vm5 = vcmask 64512   ;;  %s271_s30 = sshll.u32 %s474_s3, 4  ;;  %s272_s30 = int_to_ptr.hbm [resolvable:$true] %s271_s30 }
   0x9   :  { %v53_v8 = vadd.f32 %v398_v6, %v396_v5  ;;  %60 = vadd.xlane.f32.xlu1 %v59_v3  ;;  %v408_v11 = vld [vmem:[#allocation2 + $0x10] sm:$0xff]  ;;  %v410_v12 = vld [vmem:[#allocation2 + $0x18] sm:$0xff]  ;;  %v412_v13 = vld [vmem:[#allocation2 + $0x60] sm:$0xff]  ;;  %v62_v15 = vadd.f32 %v406_v10, %v404_v9 }
   0xa   :  { %48 = vadd.xlane.f32.xlu0 %v47_v7  ;;  %v414_v14 = vld [vmem:[#allocation2 + $0x68] sm:$0xff]  ;;  %v50_v16 = vadd.f32 %v410_v12, %v408_v11  ;;  %v422_v18 = vld [vmem:[#allocation2 + $0x70] sm:$0xff]  ;;  %v424_v19 = vld [vmem:[#allocation2 + $0x78] sm:$0xff]  ;;  %v94_v34 = vadd.s32 4294967288, %v92_v32  ;;  %v98_v43 = vadd.s32 4294967280, %v92_v32  ;;  %v102_v47 = vadd.s32 4294967272, %v92_v32 }
   0xb   :  { %54 = vadd.xlane.f32.xlu2 %v53_v8  ;;  %v65_v17 = vadd.f32 %v414_v14, %v412_v13  ;;  %v426_v20 = vld [vmem:[#allocation2 + $0x30] sm:$0xff]  ;;  %v428_v21 = vld [vmem:[#allocation2 + $0x38] sm:$0xff]  ;;  %v68_v22 = vadd.f32 %v424_v19, %v422_v18  ;;  %v80_v26 = vld [vmem:[%s472_s1 + $0x8] sm:$0xff] }
   0xc   :  { %v56_v23 = vadd.f32 %v428_v21, %v426_v20  ;;  %v82_v24 = vld [vmem:[%s472_s1 + $0x18] sm:$0xff]  ;;  %v81_v25 = vld [vmem:[%s472_s1 + $0x10] sm:$0xff]  ;;  %v79_v27 = vld [vmem:[%s472_s1] sm:$0xff] }
   0xd   :  { %130 = vmatpush.msra.mxu0 %v82_v24  ;;  %v139_v3 = vld [vmem:[%s473_s2] sm:$0xff]  ;;  %s359_s2 = smov [#allocation5]  }
   0xe   :  { %159 = vmatpush.msra.mxu1 %v139_v3  ;;  %s269_s27 = sshll.u32 %s359_s2, 4  ;;  %s270_s27 = int_to_ptr.vmem [resolvable:$true] %s269_s27 }
   0xf   :  { %131 = vmatpush.msra.mxu0 %v81_v25 }
  0x11   :  { %63 = vadd.xlane.f32.xlu1 %v62_v15  ;;  %132 = vmatpush.msra.mxu0 %v80_v26  ;;  %v185_v15 = vshrl.u32 %v91_v31, 7 }
  0x12   :  { %51 = vadd.xlane.f32.xlu0 %v50_v16 }
  0x13   :  { %66 = vadd.xlane.f32.xlu2 %v65_v17  ;;  %133 = vmatpush.msra.mxu0 %v79_v27  ;;  %v198_v16 = vadd.s32 16, %v185_v15  ;;  %v192_v17 = vadd.s32 8, %v185_v15 }
  0x14   :  { %291 = vset.pattern.permute.xlu2 %v185_v15 }
  0x15   :  { %293 = vset.pattern.permute.xlu1 %v198_v16  ;;  %292 = vset.pattern.permute.xlu0 %v192_v17 }
  0x19   :  { %69 = vadd.xlane.f32.xlu1 %v68_v22 }
  0x1a   :  { %57 = vadd.xlane.f32.xlu0 %v56_v23 }
  0x7c   :  { %v61_v28 = vpop.xlane.xlu1 %60 }
  0x7d   :  { %v49_v29 = vpop.xlane.xlu0 %48  ;;  %v75_v39 = vmul.f32 0.00390625, %v61_v28 }
  0x7e   :  { %v55_v30 = vpop.xlane.xlu2 %54  ;;  %v71_v40 = vmul.f32 0.00390625, %v49_v29 }
  0x7f   :  { %v106_v45 = vperm.slane %v75_v39, %v92_v32  ;;  %v73_v46 = vmul.f32 0.00390625, %v55_v30 }
  0x80   :  { %v93_v48 = vperm.slane %v71_v40, %v92_v32 }
  0x81   :  { %v99_v56 = vperm.slane %v73_v46, %v98_v43 }
  0x84   :  { %v64_v33 = vpop.xlane.xlu1 %63 }
  0x85   :  { %v76_v35 = vmul.f32 0.00390625, %v64_v33  ;;  %v52_v36 = vpop.xlane.xlu0 %51 }
  0x86   :  { %v67_v37 = vpop.xlane.xlu2 %66  ;;  %v72_v38 = vmul.f32 0.00390625, %v52_v36 }
  0x87   :  { %v77_v41 = vmul.f32 0.00390625, %v67_v37  ;;  %v107_v42 = vperm.slane %v76_v35, %v94_v34  ;;  %v204_v37 = vadd.s32 24, %v185_v15 }
  0x88   :  { %v95_v44 = vperm.slane %v72_v38, %v94_v34 }
  0x89   :  { %v109_v49 = vperm.slane %v77_v41, %v98_v43  ;;  %v108_v51 = vsel %vm96_vm0, %v107_v42, %v106_v45 }
  0x8a   :  { %v97_v54 = vsel %vm96_vm0, %v95_v44, %v93_v48 }
  0x8b   :  { %v110_v59 = vsel %vm100_vm1, %v109_v49, %v108_v51  ;;  %v101_v60 = vsel %vm100_vm1, %v99_v56, %v97_v54 }
  0x8c   :  { %v70_v50 = vpop.xlane.xlu1 %69 }
  0x8d   :  { %v78_v52 = vmul.f32 0.00390625, %v70_v50  ;;  %v58_v53 = vpop.xlane.xlu0 %57 }
  0x8e   :  { %v74_v55 = vmul.f32 0.00390625, %v58_v53 }
  0x8f   :  { %v111_v57 = vperm.slane %v78_v52, %v102_v47 }
  0x90   :  { %v103_v58 = vperm.slane %v74_v55, %v102_v47 }
  0x91   :  { %v112_v61 = vsel %vm104_vm2, %v111_v57, %v110_v59 }
  0x92   :  { %v105_v62 = vsel %vm104_vm2, %v103_v58, %v101_v60 }
  0x93   :  { %v114_v63 = vsel %vm113_vm3, %v112_v61, %v105_v62 }
  0x94   :  { %284 = vmatmul.msk.f32.vlgmr.msra.gmra.mxu0 %vm115_vm4, %v114_v63 }
 0x111   :  { %v135_v7 = vpop.f32.mrf.mxu0 }
 0x112   :  { %v138_v8 = vmax.f32 %v135_v7, 0.0 }
 0x114   :  { %285 = vmatmul.msk.f32.vlgmr.msra.gmra.mxu1 %vm140_vm5, %v138_v8 }
 0x191   :  { %v161_v22 = vpop.f32.mrf.mxu1 }
 0x192   :  { %v286_v23 = vmul.f32 -1.442695, %v161_v22 }
 0x194   :  { %300 = vpow2.f32 %v286_v23 }
 0x19a   :  { %v301_v24 = vpop.eup %300 }
 0x19b   :  { %v167_v25 = vadd.f32 1.0, %v301_v24 }
 0x19d   :  { %302 = vrcp.f32 %v167_v25  ;;  %v179_v29 = vand.u32 2147483648, %v167_v25  ;;  %v177_v32 = vand.u32 2147483647, %v167_v25  ;;  %vm173_vm7 = vweird.f32 %v167_v25 }
 0x19f   :  { %v180_v31 = vor.u32 1.1754944e-38, %v179_v29  ;;  %vm178_vm9 = vcmp.eq.f32.partialorder %v177_v32, 8.507059e+37 }
 0x1a3   :  { %v303_v26 = vpop.eup %302 }
 0x1a4   :  { %v169_v27 = vmul.f32 %v303_v26, %v167_v25  ;;  %vm174_vm6 = vweird.f32 %v303_v26 }
 0x1a5   :  { %vm175_vm8 = vmor %vm173_vm7, %vm174_vm6 }
 0x1a6   :  { %v170_v28 = vsub.f32 1.0, %v169_v27 }
 0x1a8   :  { %v171_v30 = vmul.f32 %v303_v26, %v170_v28 }
 0x1aa   :  { %v172_v33 = vadd.f32 %v303_v26, %v171_v30 }
 0x1ac   :  { %v176_v34 = vsel %vm175_vm8, %v303_v26, %v172_v33 }
 0x1ad   :  { %v181_v35 = vsel %vm178_vm9, %v180_v31, %v176_v34 }
 0x1ae   :  { %v183_v36 = vperm.slane %v181_v35, 0  ;;  %v208_v38 = vperm.slane %v181_v35, 1 }
 0x1b0   :  { %200 = vperm.xlu1 %293, %v183_v36   ;;  %194 = vperm.xlu0 %292, %v183_v36  }
 0x1b1   :  { %188 = vperm.xlu2 %291, %v183_v36  }
 0x1b8   :  { %296 = vset.pattern.permute.xlu1 %v192_v17  ;;  %299 = vset.pattern.permute.xlu0 %v204_v37 }
 0x1b9   :  { %294 = vset.pattern.permute.xlu2 %v204_v37 }
 0x1c0   :  { %219 = vperm.xlu1 %296, %v208_v38  }
 0x1c1   :  { %206 = vperm.xlu2 %294, %v183_v36  }
 0x1c8   :  { %298 = vset.pattern.permute.xlu1 %v204_v37 }
 0x1c9   :  { %295 = vset.pattern.permute.xlu2 %v185_v15 }
 0x1d0   :  { %231 = vperm.xlu1 %298, %v208_v38  }
 0x1d1   :  { %213 = vperm.xlu2 %295, %v208_v38  }
 0x1d9   :  { %297 = vset.pattern.permute.xlu2 %v198_v16 }
 0x1e1   :  { %225 = vperm.xlu2 %297, %v208_v38  }
 0x20b   :  { %v189_v39 = vpop.permute.xlu2 %188 }
 0x20c   :  { %v233_v40 = vmul.f32 %v189_v39, %v390_v2  ;;  %v234_v41 = vmul.f32 %v189_v39, %v394_v4 }
 0x20e   :  { %249 = vst [vmem:[#allocation5] sm:$0xff] %v233_v40 }
 0x20f   :  { %250 = vst [vmem:[#allocation5 + $0x8] sm:$0xff] %v234_v41 }
 0x21b   :  { %v207_v42 = vpop.permute.xlu2 %206 }
 0x21c   :  { %v239_v43 = vmul.f32 %v207_v42, %v426_v20  ;;  %v240_v44 = vmul.f32 %v207_v42, %v428_v21 }
 0x21e   :  { %255 = vst [vmem:[#allocation5 + $0x30] sm:$0xff] %v239_v43 }
 0x21f   :  { %256 = vst [vmem:[#allocation5 + $0x38] sm:$0xff] %v240_v44 }
 0x222   :  { %v201_v45 = vpop.permute.xlu1 %200  ;;  %v195_v46 = vpop.permute.xlu0 %194 }
 0x223   :  { %v237_v47 = vmul.f32 %v201_v45, %v396_v5  ;;  %v238_v48 = vmul.f32 %v201_v45, %v398_v6  ;;  %v235_v49 = vmul.f32 %v195_v46, %v408_v11  ;;  %v236_v2 = vmul.f32 %v195_v46, %v410_v12 }
 0x225   :  { %253 = vst [vmem:[#allocation5 + $0x20] sm:$0xff] %v237_v47 }
 0x226   :  { %254 = vst [vmem:[#allocation5 + $0x28] sm:$0xff] %v238_v48 }
 0x227   :  { %251 = vst [vmem:[#allocation5 + $0x10] sm:$0xff] %v235_v49 }
 0x228   :  { %252 = vst [vmem:[#allocation5 + $0x18] sm:$0xff] %v236_v2 }
 0x22b   :  { %v214_v4 = vpop.permute.xlu2 %213 }
 0x22c   :  { %v241_v20 = vmul.f32 %v214_v4, %v386_v0  ;;  %v242_v21 = vmul.f32 %v214_v4, %v388_v1 }
 0x22e   :  { %257 = vst [vmem:[#allocation5 + $0x40] sm:$0xff] %v241_v20 }
 0x22f   :  { %258 = vst [vmem:[#allocation5 + $0x48] sm:$0xff] %v242_v21 }
 0x232   :  { %v220_v50 = vpop.permute.xlu1 %219 }
 0x233   :  { %v243_v5 = vmul.f32 %v220_v50, %v404_v9  ;;  %v244_v6 = vmul.f32 %v220_v50, %v406_v10 }
 0x235   :  { %259 = vst [vmem:[#allocation5 + $0x50] sm:$0xff] %v243_v5 }
 0x236   :  { %260 = vst [vmem:[#allocation5 + $0x58] sm:$0xff] %v244_v6 }
 0x23b   :  { %v226_v11 = vpop.permute.xlu2 %225 }
 0x23c   :  { %v245_v12 = vmul.f32 %v226_v11, %v412_v13  ;;  %v246_v51 = vmul.f32 %v226_v11, %v414_v14 }
 0x23e   :  { %261 = vst [vmem:[#allocation5 + $0x60] sm:$0xff] %v245_v12 }
 0x23f   :  { %262 = vst [vmem:[#allocation5 + $0x68] sm:$0xff] %v246_v51 }
 0x242   :  { %v232_v0 = vpop.permute.xlu1 %231 }
 0x243   :  { %v247_v1 = vmul.f32 %v232_v0, %v422_v18  ;;  %v248_v9 = vmul.f32 %v232_v0, %v424_v19 }
 0x245   :  { %263 = vst [vmem:[#allocation5 + $0x70] sm:$0xff] %v247_v1 }
 0x246   :  { %264 = vst [vmem:[#allocation5 + $0x78] sm:$0xff] %v248_v9 }
 0x247   :  { %277 = dma.vmem_to_hbm [thread:$0]  %s270_s27, 2048, %s272_s30, [#allocation4], %s357_s17, %s357_s17, %s358_s18  }
 0x248   :  { %354 = dma.done.wait [#allocation4], 2048  }
 0x249   :  { %355 = vsyncadd [#allocation4], 4294965248 }
 0x24a   :  { %282 = vsyncpa [#allocation3], 1 }
 0x24b   :  { %283 = vsyncpa [#allocation4], 1 }

</bundles_post_ra>
